<compile_context>
chip_gen: v6e
topology: v6e:2x2x1
jax: 0.10.0
libtpu: 0.0.40
codegen_flags: <defaults>
</compile_context>

<pallas_src>
import functools

import jax
import jax.numpy as jnp
from jax.experimental import pallas as pl
from jax.experimental.pallas import tpu as pltpu

EPS = 1e-5

# Constant operands (weights/biases, index_map always (0,0)) don't need
# double-buffering; single-buffer them when this JAX supports pipeline_mode.
_HAS_BUFFERED = hasattr(pl, "Buffered")


def _round_up(n, m):
    return ((n + m - 1) // m) * m


@functools.lru_cache(maxsize=1)
def _vmem_scoped_cap_bytes():
    """Generation-aware scoped-VMEM cap (perf-only, never affects correctness)."""
    try:
        cap = int(pltpu.get_tpu_info().vmem_capacity_bytes)
    except Exception:  # hardware-info query only; assume the smaller (v7x) part
        cap = 64 << 20
    return (100 << 20) if cap > (64 << 20) else (48 << 20)


def _residual_block_kernel(x_ref, w1_ref, b1_ref, w2_ref, b2_ref, o_ref):
    # ---- LayerNorm1 (gamma1/beta1 folded into W1'/b1') ----
    x = x_ref[...].astype(jnp.float32)
    mu1 = jnp.mean(x, axis=-1, keepdims=True)
    xc = x - mu1                                      # hoisted: reused for var & z
    var1 = jnp.mean(xc * xc, axis=-1, keepdims=True)  # biased, like nn.LayerNorm
    z1 = xc * jax.lax.rsqrt(var1 + EPS)
    # x/xc/z1 are dead after the first matmul; the residual re-reads x_ref from
    # VMEM at the end so the f32 slab is not held live across both MXU sections.

    # ---- Linear1 (bf16 MXU, f32 accumulate) + SiLU ----
    h = jnp.dot(z1.astype(jnp.bfloat16), w1_ref[...],
                preferred_element_type=jnp.float32) + b1_ref[...]
    h = h * jax.nn.sigmoid(h)          # SiLU / Swish (EUP sigmoid, VPU mul)
    # dropout (eval mode) = identity

    # ---- LayerNorm2 (gamma2/beta2 folded into W2'/b2') ----
    mu2 = jnp.mean(h, axis=-1, keepdims=True)
    hc = h - mu2
    var2 = jnp.mean(hc * hc, axis=-1, keepdims=True)
    z2 = hc * jax.lax.rsqrt(var2 + EPS)

    # ---- Linear2 + residual (x re-read from the VMEM tile) ----
    h2 = jnp.dot(z2.astype(jnp.bfloat16), w2_ref[...],
                 preferred_element_type=jnp.float32) + b2_ref[...]
    o_ref[...] = (h2 + x_ref[...].astype(jnp.float32)).astype(o_ref.dtype)


def _pick_row_tile(rows, dim, row_tile, vmem_cap):
    """Row tile: multiple of 8, bounded by VMEM budget and row count."""
    # Per-row activation bytes: x/out f32 tiles double-buffered (2 arrays x 2
    # buffers x 4B) + ~8 f32 (tr, dim) intermediates.
    per_row_bytes = (2 * 2 * 4 + 8 * 4) * dim
    weight_bytes = 2 * dim * dim * 2 * (1 if _HAS_BUFFERED else 2)
    bias_bytes = 2 * dim * 4 * (1 if _HAS_BUFFERED else 2)
    avail = max(vmem_cap - weight_bytes - bias_bytes - (4 << 20), 1 << 20)
    tr_cap = max(8, (avail // per_row_bytes) // 8 * 8)
    tr = min(_round_up(row_tile, 8), tr_cap, _round_up(rows, 8))
    # v7x megacore: guarantee >= 2 grid steps when there are enough rows so
    # both TensorCores get work (harmless ~0.35us on single-TC v5e/v6e).
    if rows > 8 and pl.cdiv(rows, tr) < 2:
        tr = max(8, _round_up(pl.cdiv(rows, 2), 8))
    return tr


@functools.partial(jax.jit, static_argnames=("row_tile",))
def _residual_block_2d(x2, w1, b1, w2, b2, *, row_tile):
    rows, dim = x2.shape
    vmem_cap = _vmem_scoped_cap_bytes()
    tr = _pick_row_tile(rows, dim, row_tile, vmem_cap)
    grid = (pl.cdiv(rows, tr),)  # partial tail block masked by Pallas (no pad/slice)

    # Scoped-VMEM limit sized to this config (matches the buffering mode used).
    act_bytes = (2 * 2 * 4 + 8 * 4) * dim * tr
    weight_bytes = 2 * dim * dim * 2 * (1 if _HAS_BUFFERED else 2)
    bias_bytes = 2 * dim * 4 * (1 if _HAS_BUFFERED else 2)
    vmem_limit = int(min(vmem_cap,
                         max(act_bytes + weight_bytes + bias_bytes + (8 << 20),
                             32 << 20)))

    const_kwargs = dict(pipeline_mode=pl.Buffered(1)) if _HAS_BUFFERED else {}
    row_spec = pl.BlockSpec((tr, dim), lambda i: (i, 0))
    mat_spec = pl.BlockSpec((dim, dim), lambda i: (0, 0), **const_kwargs)
    vec_spec = pl.BlockSpec((1, dim), lambda i: (0, 0), **const_kwargs)

    cost = pl.CostEstimate(
        flops=4 * rows * dim * dim,                       # two dim x dim matmuls
        transcendentals=rows * dim,                       # sigmoid
        bytes_accessed=2 * rows * dim * 4                 # x in + out (f32)
        + 2 * dim * dim * 2 + 2 * dim * 4,                # bf16 weights + biases
    )

    return pl.pallas_call(
        _residual_block_kernel,
        out_shape=jax.ShapeDtypeStruct((rows, dim), x2.dtype),
        grid_spec=pltpu.PrefetchScalarGridSpec(
            num_scalar_prefetch=0,
            grid=grid,
            in_specs=[
                row_spec,              # x tile
                mat_spec, vec_spec,    # W1' (bf16), b1' (f32)
                mat_spec, vec_spec,    # W2' (bf16), b2' (f32)
            ],
            out_specs=row_spec,
        ),
        compiler_params=pltpu.CompilerParams(
            dimension_semantics=("parallel",),
            vmem_limit_bytes=vmem_limit,
        ),
        cost_estimate=cost,
    )(x2, w1, b1, w2, b2)


def aicube_residual_block(x, prepared, row_tile=512):
    """x: [..., dim] float32; prepared: output of prepare_params()."""
    shape = x.shape
    x2 = x.reshape(-1, shape[-1])
    out = _residual_block_2d(x2, prepared["w1"], prepared["b1"],
                             prepared["w2"], prepared["b2"], row_tile=row_tile)
    return out.reshape(shape)


def init_params(key, dim):
    """Init mimicking nn.Linear / nn.LayerNorm shapes (W^T passed to kernel)."""
    k1, k2, k3, k4, k5, k6, k7, k8 = jax.random.split(key, 8)
    bound = 1.0 / jnp.sqrt(dim)
    w1 = jax.random.uniform(k1, (dim, dim), jnp.float32, -bound, bound)
    b1 = jax.random.uniform(k2, (dim,), jnp.float32, -bound, bound)
    w2 = jax.random.uniform(k3, (dim, dim), jnp.float32, -bound, bound)
    b2 = jax.random.uniform(k4, (dim,), jnp.float32, -bound, bound)
    # nn.LayerNorm inits gamma=1, beta=0; perturb so the affine-fold path is
    # actually exercised by the correctness check.
    g1 = 1.0 + 0.1 * jax.random.normal(k5, (dim,), jnp.float32)
    be1 = 0.05 * jax.random.normal(k6, (dim,), jnp.float32)
    g2 = 1.0 + 0.1 * jax.random.normal(k7, (dim,), jnp.float32)
    be2 = 0.05 * jax.random.normal(k8, (dim,), jnp.float32)
    return {
        "w1t": w1.T, "b1": b1.reshape(1, dim),
        "w2t": w2.T, "b2": b2.reshape(1, dim),
        "g1": g1.reshape(1, dim), "be1": be1.reshape(1, dim),
        "g2": g2.reshape(1, dim), "be2": be2.reshape(1, dim),
    }


def prepare_params(p):
    """Fold LayerNorm affine into the following Linear; cast weights to bf16."""
    w1f = (p["g1"].reshape(-1, 1) * p["w1t"]).astype(jnp.bfloat16)
    b1f = (p["b1"] + p["be1"] @ p["w1t"]).astype(jnp.float32)
    w2f = (p["g2"].reshape(-1, 1) * p["w2t"]).astype(jnp.bfloat16)
    b2f = (p["b2"] + p["be2"] @ p["w2t"]).astype(jnp.float32)
    return {"w1": w1f, "b1": b1f, "w2": w2f, "b2": b2f}


def _reference(x, p):
    """Pure-JAX f32 reference with the original (unfolded) parameters."""
    def ln(h, g, b):
        mu = jnp.mean(h, axis=-1, keepdims=True)
        var = jnp.mean((h - mu) ** 2, axis=-1, keepdims=True)
        return (h - mu) / jnp.sqrt(var + EPS) * g + b
    h = ln(x, p["g1"], p["be1"])
    h = h @ p["w1t"] + p["b1"]
    h = h * jax.nn.sigmoid(h)
    h = ln(h, p["g2"], p["be2"])
    h = h @ p["w2t"] + p["b2"]
    return h + x


if __name__ == "__main__":
    key = jax.random.PRNGKey(0)
    kx1, kx2, kp = jax.random.split(key, 3)

    dim = 128                         # lane-dense: multiple of 128
    params = init_params(kp, dim)
    prepared = prepare_params(params)

    # Test 1: (batch, seq, dim) = (2, 8, 128) -> 16 rows; grid is split into 2
    # steps so the parallel row axis has work for both v7x TensorCores.
    x1 = jax.random.normal(kx1, (2, 8, dim), jnp.float32)
    out1 = jax.block_until_ready(aicube_residual_block(x1, prepared))
    ref1 = _reference(x1.reshape(-1, dim), params).reshape(x1.shape)
    assert out1.shape == x1.shape
    assert jnp.allclose(out1, ref1, atol=5e-2, rtol=5e-2), "mismatch vs reference (test 1)"

    # Test 2: ragged row count (3*5 = 15 rows) exercises the masked partial
    # tail block (no host-side padding) and a multi-step row grid.
    x2 = jax.random.normal(kx2, (3, 5, dim), jnp.float32)
    out2 = jax.block_until_ready(aicube_residual_block(x2, prepared, row_tile=8))
    ref2 = _reference(x2.reshape(-1, dim), params).reshape(x2.shape)
    assert out2.shape == x2.shape
    assert jnp.allclose(out2, ref2, atol=5e-2, rtol=5e-2), "mismatch vs reference (test 2)"

    print("KERNEL_OK")
</pallas_src>

<mosaic_0001>
module attributes {stable_mosaic.version = 11 : i64} {
  func.func @_residual_block_kernel(%arg0: i32, %arg1: memref<8x128xf32, #tpu.memory_space<vmem>>, %arg2: memref<128x128xbf16, #tpu.memory_space<vmem>>, %arg3: memref<1x128xf32, #tpu.memory_space<vmem>>, %arg4: memref<128x128xbf16, #tpu.memory_space<vmem>>, %arg5: memref<1x128xf32, #tpu.memory_space<vmem>>, %arg6: memref<8x128xf32, #tpu.memory_space<vmem>>) attributes {dimension_semantics = [#tpu.dimension_semantics<parallel>], iteration_bounds = array<i64: 2>, scalar_prefetch = 0 : i64, scratch_operands = 0 : i64, tpu.core_type = #tpu.core_type<tc>, window_params = [{transform_indices = @transform_0, window_bounds = array<i64: 8, 128>}, {pipeline_mode = #tpu.pipeline_mode<synchronous>, transform_indices = @transform_1, window_bounds = array<i64: 128, 128>}, {pipeline_mode = #tpu.pipeline_mode<synchronous>, transform_indices = @transform_2, window_bounds = array<i64: 1, 128>}, {pipeline_mode = #tpu.pipeline_mode<synchronous>, transform_indices = @transform_3, window_bounds = array<i64: 128, 128>}, {pipeline_mode = #tpu.pipeline_mode<synchronous>, transform_indices = @transform_4, window_bounds = array<i64: 1, 128>}, {transform_indices = @transform_5, window_bounds = array<i64: 8, 128>}]} {
    %c0 = arith.constant 0 : index
    %c0_0 = arith.constant 0 : index
    %0 = vector.load %arg1[%c0, %c0_0] : memref<8x128xf32, #tpu.memory_space<vmem>>, vector<8x128xf32>
    %cst = arith.constant dense<0.000000e+00> : vector<8xf32>
    %1 = vector.multi_reduction <add>, %0, %cst [1] : vector<8x128xf32> to vector<8xf32>
    %2 = vector.shape_cast %1 : vector<8xf32> to vector<8x1xf32>
    %cst_1 = arith.constant 1.280000e+02 : f32
    %3 = vector.broadcast %cst_1 : f32 to vector<8x1xf32>
    %4 = arith.divf %2, %3 : vector<8x1xf32>
    %5 = vector.broadcast %4 : vector<8x1xf32> to vector<8x128xf32>
    %6 = arith.subf %0, %5 : vector<8x128xf32>
    %7 = arith.mulf %6, %6 : vector<8x128xf32>
    %cst_2 = arith.constant dense<0.000000e+00> : vector<8xf32>
    %8 = vector.multi_reduction <add>, %7, %cst_2 [1] : vector<8x128xf32> to vector<8xf32>
    %9 = vector.shape_cast %8 : vector<8xf32> to vector<8x1xf32>
    %cst_3 = arith.constant 1.280000e+02 : f32
    %10 = vector.broadcast %cst_3 : f32 to vector<8x1xf32>
    %11 = arith.divf %9, %10 : vector<8x1xf32>
    %cst_4 = arith.constant 9.99999974E-6 : f32
    %12 = vector.broadcast %cst_4 : f32 to vector<8x1xf32>
    %13 = arith.addf %11, %12 : vector<8x1xf32>
    %14 = math.rsqrt %13 : vector<8x1xf32>
    %15 = vector.broadcast %14 : vector<8x1xf32> to vector<8x128xf32>
    %16 = arith.mulf %6, %15 : vector<8x128xf32>
    %17 = arith.truncf %16 : vector<8x128xf32> to vector<8x128xbf16>
    %c0_5 = arith.constant 0 : index
    %c0_6 = arith.constant 0 : index
    %18 = vector.load %arg2[%c0_5, %c0_6] : memref<128x128xbf16, #tpu.memory_space<vmem>>, vector<128x128xbf16>
    %cst_7 = arith.constant dense<0.000000e+00> : vector<8x128xf32>
    %19 = tpu.matmul %17, %18, %cst_7 {dimension_numbers = #tpu.dot_dimension_numbers<[1], [0], [0], [1], [0, 0, 1, 1], [], []>} : vector<8x128xbf16>, vector<128x128xbf16>, vector<8x128xf32> -> vector<8x128xf32>
    %c0_8 = arith.constant 0 : index
    %c0_9 = arith.constant 0 : index
    %20 = vector.load %arg3[%c0_8, %c0_9] : memref<1x128xf32, #tpu.memory_space<vmem>>, vector<1x128xf32>
    %21 = vector.broadcast %20 : vector<1x128xf32> to vector<8x128xf32>
    %22 = arith.addf %19, %21 : vector<8x128xf32>
    %23 = arith.negf %22 : vector<8x128xf32>
    %24 = math.exp %23 : vector<8x128xf32>
    %cst_10 = arith.constant 1.000000e+00 : f32
    %25 = vector.broadcast %cst_10 : f32 to vector<8x128xf32>
    %26 = arith.addf %25, %24 : vector<8x128xf32>
    %27 = arith.divf %25, %26 : vector<8x128xf32>
    %28 = arith.mulf %22, %27 : vector<8x128xf32>
    %cst_11 = arith.constant dense<0.000000e+00> : vector<8xf32>
    %29 = vector.multi_reduction <add>, %28, %cst_11 [1] : vector<8x128xf32> to vector<8xf32>
    %30 = vector.shape_cast %29 : vector<8xf32> to vector<8x1xf32>
    %cst_12 = arith.constant 1.280000e+02 : f32
    %31 = vector.broadcast %cst_12 : f32 to vector<8x1xf32>
    %32 = arith.divf %30, %31 : vector<8x1xf32>
    %33 = vector.broadcast %32 : vector<8x1xf32> to vector<8x128xf32>
    %34 = arith.subf %28, %33 : vector<8x128xf32>
    %35 = arith.mulf %34, %34 : vector<8x128xf32>
    %cst_13 = arith.constant dense<0.000000e+00> : vector<8xf32>
    %36 = vector.multi_reduction <add>, %35, %cst_13 [1] : vector<8x128xf32> to vector<8xf32>
    %37 = vector.shape_cast %36 : vector<8xf32> to vector<8x1xf32>
    %cst_14 = arith.constant 1.280000e+02 : f32
    %38 = vector.broadcast %cst_14 : f32 to vector<8x1xf32>
    %39 = arith.divf %37, %38 : vector<8x1xf32>
    %cst_15 = arith.constant 9.99999974E-6 : f32
    %40 = vector.broadcast %cst_15 : f32 to vector<8x1xf32>
    %41 = arith.addf %39, %40 : vector<8x1xf32>
    %42 = math.rsqrt %41 : vector<8x1xf32>
    %43 = vector.broadcast %42 : vector<8x1xf32> to vector<8x128xf32>
    %44 = arith.mulf %34, %43 : vector<8x128xf32>
    %45 = arith.truncf %44 : vector<8x128xf32> to vector<8x128xbf16>
    %c0_16 = arith.constant 0 : index
    %c0_17 = arith.constant 0 : index
    %46 = vector.load %arg4[%c0_16, %c0_17] : memref<128x128xbf16, #tpu.memory_space<vmem>>, vector<128x128xbf16>
    %cst_18 = arith.constant dense<0.000000e+00> : vector<8x128xf32>
    %47 = tpu.matmul %45, %46, %cst_18 {dimension_numbers = #tpu.dot_dimension_numbers<[1], [0], [0], [1], [0, 0, 1, 1], [], []>} : vector<8x128xbf16>, vector<128x128xbf16>, vector<8x128xf32> -> vector<8x128xf32>
    %c0_19 = arith.constant 0 : index
    %c0_20 = arith.constant 0 : index
    %48 = vector.load %arg5[%c0_19, %c0_20] : memref<1x128xf32, #tpu.memory_space<vmem>>, vector<1x128xf32>
    %49 = vector.broadcast %48 : vector<1x128xf32> to vector<8x128xf32>
    %50 = arith.addf %47, %49 : vector<8x128xf32>
    %c0_21 = arith.constant 0 : index
    %c0_22 = arith.constant 0 : index
    %51 = vector.load %arg1[%c0_21, %c0_22] : memref<8x128xf32, #tpu.memory_space<vmem>>, vector<8x128xf32>
    %52 = arith.addf %50, %51 : vector<8x128xf32>
    %c0_23 = arith.constant 0 : index
    %c0_24 = arith.constant 0 : index
    %53 = vector.load %arg6[%c0_23, %c0_24] : memref<8x128xf32, #tpu.memory_space<vmem>>, vector<8x128xf32>
    tpu.vector_store %arg6[%c0_23, %c0_24], %52 {strides = array<i32>} : memref<8x128xf32, #tpu.memory_space<vmem>>, vector<8x128xf32>,
    return
  }
  func.func @transform_0(%arg0: i32) -> (i32, i32) {
    %c0_i32 = arith.constant 0 : i32
    %c0_i32_0 = arith.constant 0 : i32
    return %arg0, %c0_i32 : i32, i32
  }
  func.func @transform_1(%arg0: i32) -> (i32, i32) {
    %c0_i32 = arith.constant 0 : i32
    %c0_i32_0 = arith.constant 0 : i32
    %c0_i32_1 = arith.constant 0 : i32
    return %c0_i32, %c0_i32_0 : i32, i32
  }
  func.func @transform_2(%arg0: i32) -> (i32, i32) {
    %c0_i32 = arith.constant 0 : i32
    %c0_i32_0 = arith.constant 0 : i32
    %c0_i32_1 = arith.constant 0 : i32
    return %c0_i32, %c0_i32_0 : i32, i32
  }
  func.func @transform_3(%arg0: i32) -> (i32, i32) {
    %c0_i32 = arith.constant 0 : i32
    %c0_i32_0 = arith.constant 0 : i32
    %c0_i32_1 = arith.constant 0 : i32
    return %c0_i32, %c0_i32_0 : i32, i32
  }
  func.func @transform_4(%arg0: i32) -> (i32, i32) {
    %c0_i32 = arith.constant 0 : i32
    %c0_i32_0 = arith.constant 0 : i32
    %c0_i32_1 = arith.constant 0 : i32
    return %c0_i32, %c0_i32_0 : i32, i32
  }
  func.func @transform_5(%arg0: i32) -> (i32, i32) {
    %c0_i32 = arith.constant 0 : i32
    %c0_i32_0 = arith.constant 0 : i32
    return %arg0, %c0_i32 : i32, i32
  }
}

</mosaic_0001>

<bundles_post_ra>
// kernel: _residual_block_2d.1
= control target key start
LH: loop header
LB: loop body
LE: loop exit
PB: predicated region body
PF: predicated region fallthrough
CT: control target
= control target key end

     0   :  { %10 = vsyncpa [#allocation3], 0  ;;  %s1216_s0 = inlined_call_operand.hbm [shape: f32[16,128], index: 0, kind: input, shape index: {}]   ;;  %s1217_s1 = inlined_call_operand.hbm [shape: bf16[128,128], index: 1, kind: input, shape index: {}]   ;;  %s1218_s2 = inlined_call_operand.vmem [shape: f32[1,128], index: 2, kind: input, shape index: {}]   ;;  %s1219_s3 = inlined_call_operand.hbm [shape: bf16[128,128], index: 3, kind: input, shape index: {}]   ;;  %s1220_s4 = inlined_call_operand.vmem [shape: f32[1,128], index: 4, kind: input, shape index: {}]   ;;  %s1221_s5 = inlined_call_operand.hbm [shape: f32[16,128], index: 5, kind: output, shape index: {}]  }
   0x1   :  { %12 = vsyncpa [#allocation3 + $0x1], 0 }
   0x2   :  { %13 = vsyncpa [#allocation6], 0 }
   0x3   :  { %14 = vsyncpa [#allocation4], 0 }
   0x4   :  { %16 = vsyncpa [#allocation4 + $0x1], 0  ;;  %s1006_s18 = smov 0   ;;  %s1008_s19 = smov 0  }
   0x5   :  { %s1010_s20 = smov 0   ;;  %s1012_s21 = smov 0  }
   0x6 LB: > { %s1027_s22 = sadd.s32 4294967295, %s966_s21   ;;  %s630_s23 = sadd.s32 4294967294, %s966_s21   ;;  %s966_s21 = sphi %s1012_s21, %s1243_s21   ;;  %s962_s20 = sphi %s1010_s20, %s1242_s20   ;;  %s958_s19 = sphi %s1008_s19, %s1241_s19   ;;  %s954_s18 = sphi %s1006_s18, %s1240_s18  }
   0x7   : > { %p42_p0 = scmp.ne.s32.totalorder %s958_s19, %s954_s18  ;;  %p1222_p1 = scmp.eq.s32.totalorder %s1027_s22, 0 }
   0x8   : > { %p156_p3 = scmp.eq.s32.totalorder %s630_s23, 1  ;;  %p631_p5 = scmp.ge.s32.totalorder %s966_s21, 1 }
   0x9   : > { %p1036_p4 = por %p1222_p1, %p42_p0  ;;  %p163_p7 = scmp.lt.s32.totalorder %s966_s21, 3 }
   0xa   : > { %p1041_p6 = por %p156_p3, %p42_p0  ;;  %s968_s27 = smov [#allocation5]  }
   0xb   : > { %s1226_s24 = scalar_select %p1036_p4, 1, 0 }
   0xc   : > { %s1227_s25 = scalar_select %p1041_p6, 1, 0 }
   0xd   : > { %p1046_p8 = pnand %p631_p5, %p163_p7  ;;  %s175_s28 = sshll.u32 %s968_s27, 4  ;;  %s176_s28 = int_to_ptr.vmem [resolvable:$true] %s175_s28 }
   0xe   : > { %s969_s30 = smov [#allocation7]   ;;  %s829_s7 = scalar_lea.vmem %s176_s28, 1024 }
   0xf   : > { %s1228_s26 = scalar_select %p1046_p8, 1, 0 }
  0x10   : > { %p735_p9 = pneg %p1046_p8  ;;  %s191_s6 = sshll.u32 %s969_s30, 4  ;;  %s192_s6 = int_to_ptr.vmem [resolvable:$true] %s191_s6 }
  0x11   : > { %p830_p13 = scmp.ne.s32.totalorder %s176_s28, %s829_s7  ;;  %p837_p5 = scmp.lt.s32.totalorder %s176_s28, %s176_s28 }
  0x12   : > { %p1055_p11 = pnand %p735_p9, %p1222_p1  ;;  %p838_p7 = scmp.lt.s32.totalorder %s829_s7, %s829_s7 }
  0x14   : > { %p820_p12 = pneg %p1055_p11  ;;  %p839_p10 = por %p838_p7, %p837_p5 }
  0x16   : > { %p832_p0 = pnand %p830_p13, %p820_p12 }
  0x18   : > { %p833_p3 = pneg %p832_p0 }
  0x1a   : > { %p840_p9 = pnand %p839_p10, %p833_p3 }
  0x1c   : > { %843 = shalt.err (!%p840_p9)
}
  0x1d   : > { %s970_s8 = smov 64   ;;  %s971_s9 = smov 4  }
  0x1e   : > { %738 = dma.hbm_to_vmem [thread:$0]  (!%p1055_p11), %s1217_s1, 1024, %s176_s28, [#allocation6], %s970_s8, %s970_s8, %s971_s9  }
  0x1f   : > { %s855_s12 = scalar_lea.vmem %s192_s6, 1024  ;;  %p863_p2 = scmp.lt.s32.totalorder %s192_s6, %s192_s6 }
  0x20   : > { %p856_p1 = scmp.ne.s32.totalorder %s192_s6, %s855_s12  ;;  %p864_p6 = scmp.lt.s32.totalorder %s855_s12, %s855_s12 }
  0x22   : > { %p858_p13 = pnand %p856_p1, %p820_p12  ;;  %p865_p5 = por %p864_p6, %p863_p2 }
  0x24   : > { %p859_p0 = pneg %p858_p13 }
  0x26   : > { %p866_p10 = pnand %p865_p5, %p859_p0 }
  0x28   : > { %869 = shalt.err (!%p866_p10)
}
  0x29   : > { %741 = dma.hbm_to_vmem [thread:$0]  (!%p1055_p11), %s1219_s3, 1024, %s192_s6, [#allocation6], %s970_s8, %s970_s8, %s971_s9  }
  0x2a   : > { %s1078_s15 = sadd.s32 1, %s966_s21   ;;  %s29_s16 = sadd.s32 1, %s962_s20 }
  0x2b   : > { %s26_s17 = ssub.s32 %s966_s21, %s1078_s15  ;;  %p36_p1 = scmp.ne.s32.totalorder %s962_s20, %s958_s19 }
  0x2c   : > { %p27_p2 = scmp.eq.s32.totalorder %s26_s17, 0  ;;  %p37_p6 = scmp.eq.s32.totalorder %s966_s21, 0 }
  0x2d   : > { %p1230_p12 = scmp.eq.s32.totalorder %s1027_s22, 1  ;;  %p752_p7 = scmp.lt.s32.totalorder %s966_s21, 2 }
  0x2e   : > { %s1094_s27 = scalar_select %p27_p2, %s962_s20, %s29_s16  }
  0x2f   : > { %p1088_p3 = por %p1230_p12, %p36_p1  ;;  %p38_p9 = por %p37_p6, %p36_p1 }
  0x30   : > { %s208_s28 = sand.u32 1, %s962_s20   ;;  %s636_s30 = sshll.u32 %s966_s21, 7 }
  0x31   : > { %s1231_s23 = scalar_select %p1088_p3, 1, 0 }
  0x32   : > { %s635_s29 = sshll.u32 %s208_s28, 3  ;;  %s1101_s8 = scalar_lea.hbm %s1216_s0, %s636_s30 }
  0x33   : > { %s212_s9 = scalar_lea.vmem [#allocation2], %s635_s29  ;;  %p1103_p11 = pnand %p752_p7, %p38_p9 }
  0x34   : > { %s219_s10 = sshll.u32 %s212_s9, 4  ;;  %s209_s12 = scalar_lea.sflag [#allocation3], %s208_s28  ;;  %s220_s10 = int_to_ptr.vmem [resolvable:$true] %s219_s10 }
  0x35   : > { %s870_s13 = scalar_lea.hbm %s1101_s8, 128  ;;  %p872_p0 = pneg %p1103_p11 }
  0x36   : > { %p871_p13 = scmp.ne.s32.totalorder %s1101_s8, %s870_s13  ;;  %s875_s17 = scalar_lea.hbm %s1216_s0, 256 }
  0x37   : > { %p876_p1 = scmp.lt.s32.totalorder %s1101_s8, %s1216_s0  ;;  %p877_p2 = scmp.lt.s32.totalorder %s875_s17, %s870_s13 }
  0x38   : > { %p873_p5 = pnand %p872_p0, %p871_p13 }
  0x39   : > { %p878_p6 = por %p877_p2, %p876_p1 }
  0x3a   : > { %p874_p10 = pneg %p873_p5 }
  0x3c   : > { %p879_p12 = pnand %p878_p6, %p874_p10 }
  0x3e   : > { %882 = shalt.err (!%p879_p12)
}
  0x3f   : > { %s883_s6 = scalar_lea.vmem %s220_s10, 128  ;;  %s972_s28 = smov [#allocation2]  }
  0x40   : > { %p884_p7 = scmp.ne.s32.totalorder %s220_s10, %s883_s6  ;;  %s888_s7 = sshll.u32 %s972_s28, 4  ;;  %s889_s7 = int_to_ptr.vmem [resolvable:$false] %s888_s7 }
  0x41   : > { %s890_s9 = scalar_lea.vmem %s889_s7, 256  ;;  %p891_p13 = scmp.lt.s32.totalorder %s220_s10, %s889_s7 }
  0x42   : > { %p886_p9 = pnand %p884_p7, %p872_p0  ;;  %p892_p5 = scmp.lt.s32.totalorder %s890_s9, %s883_s6 }
  0x44   : > { %p887_p3 = pneg %p886_p9  ;;  %p893_p4 = por %p892_p5, %p891_p13 }
  0x46   : > { %p894_p8 = pnand %p893_p4, %p887_p3 }
  0x48   : > { %897 = shalt.err (!%p894_p8)
}
  0x49   : > { %745 = dma.hbm_to_vmem [thread:$0]  (!%p1103_p11), %s1101_s8, 128, %s220_s10, %s209_s12  }
  0x4a   : > { %p1233_p10 = scmp.ne.s32.totalorder %s1228_s26, 0 }
  0x4b   : > { %s1124_s13 = sand.u32 (!%p1233_p10), 1, %s958_s19   ;;  %p1234_p4 = scmp.ne.s32.totalorder (!%p1233_p10), %s1226_s24, 0 }
  0x4c   : > { %228 = sbr.rel (%p1233_p10) target bundleno = 1134 (0x46e), region = 40  ;;  %s638_s14 = sshll.u32 (!%p1233_p10), %s1124_s13, 3 }
  0x4d   : > { %s231_s16 = scalar_lea.sflag (!%p1233_p10), [#allocation3], %s1124_s13  ;;  %s234_s17 = scalar_lea.vmem (!%p1233_p10), [#allocation2], %s638_s14 }
  0x51   : > { %941 = dma.done.wait (%p1234_p4), %s231_s16, 128  }
  0x52   : > { %943 = vsyncadd (%p1234_p4), %s231_s16, 4294967168  ;;  %p1235_p8 = scmp.eq.s32.totalorder %s1027_s22, 0 }
  0x54   : > { %945 = dma.done.wait (%p1235_p8), [#allocation6], 2048   ;;  %p1236_p3 = pmov %p1235_p8 }
  0x55   : > { %v1138_v0 = vld [vmem:[%s234_s17] sm:$0xff]  ;;  %v973_v2 = vmov 0.0   ;;  %v796_v4 = vld [vmem:[#allocation5 + $0x28] sm:$0xff]   ;;  %v797_v9 = vld [vmem:[#allocation5 + $0x20] sm:$0xff]   ;;  %vm974_vm0 = vmmov 0   ;;  %s662_s11 = sshll.u32 %s1027_s22, 7 }
  0x56   : > { %947 = vsyncadd (%p1236_p3), [#allocation6], 4294965248  ;;  %271 = vadd.xlane.f32.xlu0 %v1138_v0  ;;  %v794_v1 = vld [vmem:[#allocation5 + $0x38] sm:$0xff]   ;;  %683 = vmatprep.subr.bf16.mxu0 %v973_v2  ;;  %v795_v3 = vld [vmem:[#allocation5 + $0x30] sm:$0xff]   ;;  %s268_s12 = scalar_lea.vmem [#allocation8], %s638_s14  ;;  %s1173_s28 = scalar_lea.hbm %s1221_s5, %s662_s11 }
  0x57   : > { %703 = vmatprep.subr.bf16.mxu1 %v973_v2  ;;  %684 = vmatpush3.bf16.msra.mxu0 %v794_v1  ;;  %v798_v10 = vld [vmem:[#allocation5 + $0x18] sm:$0xff]   ;;  %v799_v11 = vld [vmem:[#allocation5 + $0x10] sm:$0xff]   ;;  %v800_v12 = vld [vmem:[#allocation5 + $0x8] sm:$0xff]   ;;  %s541_s30 = sshll.u32 %s268_s12, 4  ;;  %s528_s22 = scalar_lea.sflag [#allocation4], %s1124_s13  ;;  %s1175_s30 = int_to_ptr.vmem [resolvable:$true] %s541_s30 }
  0x58   : > { %685 = vmatprep.subr.bf16.mxu0 %v973_v2  ;;  %699 = vmatprep.mubr.msk.bf16.mxu0 %vm974_vm0, %v973_v2  ;;  %v801_v13 = vld [vmem:[#allocation5] sm:$0xff]   ;;  %v642_v20 = vld [vmem:[%s1218_s2] ss:$0 sm:$0xff]  ;;  %v802_v31 = vld [vmem:[#allocation7 + $0x38] sm:$0xff]   ;;  %s898_s7 = scalar_lea.vmem %s1175_s30, 128  ;;  %p1237_p0 = scmp.ne.s32.totalorder %s1231_s23, 0 }
  0x59   : > { %719 = vmatprep.mubr.msk.bf16.mxu1 %vm974_vm0, %v973_v2  ;;  %704 = vmatpush3.bf16.msra.mxu1 %v802_v31  ;;  %v803_v32 = vld [vmem:[#allocation7 + $0x30] sm:$0xff]   ;;  %v804_v33 = vld [vmem:[#allocation7 + $0x28] sm:$0xff]   ;;  %v805_v38 = vld [vmem:[#allocation7 + $0x20] sm:$0xff]   ;;  %p899_p11 = scmp.ne.s32.totalorder %s1175_s30, %s898_s7  ;;  %s975_s9 = smov [#allocation8]  }
  0x5a   : > { %705 = vmatprep.subr.bf16.mxu1 %v973_v2  ;;  %v806_v39 = vld [vmem:[#allocation7 + $0x18] sm:$0xff]   ;;  %v807_v40 = vld [vmem:[#allocation7 + $0x10] sm:$0xff]   ;;  %v808_v41 = vld [vmem:[#allocation7 + $0x8] sm:$0xff]   ;;  %s902_s14 = sshll.u32 %s975_s9, 4  ;;  %s903_s14 = int_to_ptr.vmem [resolvable:$false] %s902_s14 }
  0x5b   : > { %686 = vmatpush3.bf16.msra.mxu0 %v795_v3  ;;  %v809_v42 = vld [vmem:[#allocation7] sm:$0xff]   ;;  %v652_v49 = vld [vmem:[%s1220_s4] ss:$0 sm:$0xff]  ;;  %p900_p1 = pnand %p899_p11, %p1237_p0  ;;  %s904_s16 = scalar_lea.vmem %s903_s14, 256 }
  0x5c   : > { %687 = vmatprep.subr.bf16.mxu0 %v973_v2  ;;  %p905_p6 = scmp.lt.s32.totalorder %s1175_s30, %s903_s14  ;;  %p906_p12 = scmp.lt.s32.totalorder %s904_s16, %s898_s7 }
  0x5d   : > { %706 = vmatpush3.bf16.msra.mxu1 %v803_v32  ;;  %p901_p2 = pneg %p900_p1 }
  0x5e   : > { %707 = vmatprep.subr.bf16.mxu1 %v973_v2  ;;  %p907_p7 = por %p906_p12, %p905_p6 }
  0x5f   : > { %688 = vmatpush3.bf16.msra.mxu0 %v796_v4 }
  0x60   : > { %689 = vmatprep.subr.bf16.mxu0 %v973_v2  ;;  %p908_p9 = pnand %p907_p7, %p901_p2 }
  0x61   : > { %708 = vmatpush3.bf16.msra.mxu1 %v804_v33 }
  0x62   : > { %709 = vmatprep.subr.bf16.mxu1 %v973_v2 }
  0x63   : > { %690 = vmatpush3.bf16.msra.mxu0 %v797_v9 }
  0x64   : > { %691 = vmatprep.subr.bf16.mxu0 %v973_v2 }
  0x65   : > { %710 = vmatpush3.bf16.msra.mxu1 %v805_v38 }
  0x66   : > { %711 = vmatprep.subr.bf16.mxu1 %v973_v2 }
  0x67   : > { %692 = vmatpush3.bf16.msra.mxu0 %v798_v10 }
  0x68   : > { %693 = vmatprep.subr.bf16.mxu0 %v973_v2 }
  0x69   : > { %712 = vmatpush3.bf16.msra.mxu1 %v806_v39 }
  0x6a   : > { %713 = vmatprep.subr.bf16.mxu1 %v973_v2 }
  0x6b   : > { %694 = vmatpush3.bf16.msra.mxu0 %v799_v11 }
  0x6c   : > { %695 = vmatprep.subr.bf16.mxu0 %v973_v2 }
  0x6d   : > { %714 = vmatpush3.bf16.msra.mxu1 %v807_v40 }
  0x6e   : > { %715 = vmatprep.subr.bf16.mxu1 %v973_v2 }
  0x6f   : > { %696 = vmatpush3.bf16.msra.mxu0 %v800_v12 }
  0x70   : > { %697 = vmatprep.subr.bf16.mxu0 %v973_v2 }
  0x71   : > { %716 = vmatpush3.bf16.msra.mxu1 %v808_v41 }
  0x72   : > { %717 = vmatprep.subr.bf16.mxu1 %v973_v2 }
  0x73   : > { %698 = vmatpush3.bf16.msra.mxu0 %v801_v13 }
  0x75   : > { %718 = vmatpush3.bf16.msra.mxu1 %v809_v42 }
  0xdf   : > { %v272_v5 = vpop.xlane.xlu0 %271 }
  0xe0   : > { %v274_v6 = vmul.f32 0.0078125, %v272_v5 }
  0xe2   : > { %v275_v7 = vsub.f32 %v1138_v0, %v274_v6 }
  0xe4   : > { %v276_v8 = vmul.f32 %v275_v7, %v275_v7 }
  0xe6   : > { %277 = vadd.xlane.f32.xlu0 %v276_v8 }
 0x16f   : > { %v278_v14 = vpop.xlane.xlu0 %277 }
 0x170   : > { %v279_v15 = vmul.f32 0.0078125, %v278_v14 }
 0x172   : > { %v280_v16 = vadd.f32 1e-05, %v279_v15 }
 0x174   : > { %810 = vrsqrt.f32 %v280_v16 }
 0x181   : > { %v811_v17 = vpop.eup %810 }
 0x182   : > { %v282_v18 = vmul.f32 %v811_v17, %v275_v7 }
 0x184   : > { %v283_v19 = vpack.c.bf16 %v282_v18, %v282_v18 }
 0x186   : > { %700 = vmatmul.mubr.bf16.vlgmr.msra.gmra.mxu0 %v283_v19 }
 0x246   : > { %v389_v21 = vpop.f32.mrf.mxu0 }
 0x247   : > { %v390_v22 = vadd.f32 %v642_v20, %v389_v21 }
 0x248   : > { %v701_v23 = vpop.f32.mrf.mxu0 }
 0x249   : > { %v651_v24 = vmul.f32 -1.442695, %v390_v22 }
 0x24a   : > { %v392_v25 = vpop.f32.mrf.mxu0 }
 0x24b   : > { %812 = vpow2.f32 %v651_v24 }
 0x24c   : > { %v702_v26 = vpop.f32.mrf.mxu0 }
 0x258   : > { %v813_v27 = vpop.eup %812 }
 0x259   : > { %v398_v28 = vadd.f32 1.0, %v813_v27 }
 0x25b   : > { %814 = vrcp.f32 %v398_v28 }
 0x268   : > { %v815_v29 = vpop.eup %814 }
 0x269   : > { %v401_v30 = vmul.f32 %v815_v29, %v390_v22 }
 0x26b   : > { %402 = vadd.xlane.f32.xlu1 %v401_v30 }
 0x2f4   : > { %v403_v34 = vpop.xlane.xlu1 %402 }
 0x2f5   : > { %v404_v35 = vmul.f32 0.0078125, %v403_v34 }
 0x2f7   : > { %v405_v36 = vsub.f32 %v401_v30, %v404_v35 }
 0x2f9   : > { %v406_v37 = vmul.f32 %v405_v36, %v405_v36 }
 0x2fb   : > { %407 = vadd.xlane.f32.xlu1 %v406_v37 }
 0x384   : > { %v408_v43 = vpop.xlane.xlu1 %407 }
 0x385   : > { %v409_v44 = vmul.f32 0.0078125, %v408_v43 }
 0x387   : > { %v410_v45 = vadd.f32 1e-05, %v409_v44 }
 0x389   : > { %816 = vrsqrt.f32 %v410_v45 }
 0x396   : > { %v817_v46 = vpop.eup %816 }
 0x397   : > { %v412_v47 = vmul.f32 %v817_v46, %v405_v36 }
 0x399   : > { %v413_v48 = vpack.c.bf16 %v412_v47, %v412_v47 }
 0x39b   : > { %720 = vmatmul.mubr.bf16.vlgmr.msra.gmra.mxu1 %v413_v48 }
 0x45b   : > { %v519_v50 = vpop.f32.mrf.mxu1 }
 0x45c   : > { %v520_v51 = vadd.f32 %v652_v49, %v519_v50 }
 0x45d   : > { %v721_v52 = vpop.f32.mrf.mxu1 }
 0x45e   : > { %v525_v53 = vadd.f32 %v520_v51, %v1138_v0 }
 0x45f   : > { %v522_v54 = vpop.f32.mrf.mxu1 }
 0x460   : > { %526 = vst [vmem:[%s268_s12] sm:$0xff] %v525_v53 }
 0x461   : > { %v722_v55 = vpop.f32.mrf.mxu1 }
 0x462   : > { %911 = shalt.err (!%p908_p9)
}
 0x463   : > { %s912_s17 = scalar_lea.hbm %s1173_s28, 128  ;;  %s916_s26 = scalar_lea.hbm %s1221_s5, 256 }
 0x464   : > { %p913_p13 = scmp.ne.s32.totalorder %s1173_s28, %s912_s17  ;;  %p917_p4 = scmp.lt.s32.totalorder %s1173_s28, %s1221_s5 }
 0x465   : > { %p918_p8 = scmp.lt.s32.totalorder %s916_s26, %s912_s17 }
 0x466   : > { %p914_p5 = pnand %p913_p13, %p1237_p0 }
 0x467   : > { %p919_p3 = por %p918_p8, %p917_p4 }
 0x468   : > { %p915_p10 = pneg %p914_p5 }
 0x46a   : > { %p920_p11 = pnand %p919_p3, %p915_p10 }
 0x46c   : > { %923 = shalt.err (!%p920_p11)
}
 0x46d   : > { %733 = dma.vmem_to_hbm [thread:$0]  (%p1237_p0), %s1175_s30, 128, %s1173_s28, %s528_s22  }
 0x46e PF: > { %s553_s11 = sand.u32 1, %s954_s18   ;;  %p1238_p1 = scmp.ne.s32.totalorder %s1227_s25, 0 }
 0x46f   : > { %p1239_p2 = scmp.ge.s32.totalorder %s966_s21, 2  ;;  %s554_s12 = scalar_lea.sflag [#allocation4], %s553_s11 }
 0x471   : > { %p747_p6 = pnand %p1239_p2, %p1238_p1 }
 0x473   : > { %p748_p12 = pneg %p747_p6 }
 0x475   : > { %949 = dma.done.wait (%p748_p12), %s554_s12, 128  }
 0x476   : > { %951 = vsyncadd (%p748_p12), %s554_s12, 4294967168  ;;  %p19_p7 = scmp.ge.s32.totalorder %s1078_s15, 4   ;;  %s1240_s18 = smov %s958_s19 }
 0x477   : > { %s1241_s19 = smov %s962_s20  ;;  %s1242_s20 = smov %s1094_s27 }
 0x478   : > { %s1243_s21 = smov %s1078_s15  ;;  %21 = sbr.rel (!%p19_p7) target bundleno = 6 (0x6), region = 93 }
 0x47d   :  { %559 = vsyncpa [#allocation3], 1 }
 0x47e   :  { %561 = vsyncpa [#allocation3 + $0x1], 1 }
 0x47f   :  { %562 = vsyncpa [#allocation6], 1 }
 0x480   :  { %563 = vsyncpa [#allocation4], 1 }
 0x481   :  { %565 = vsyncpa [#allocation4 + $0x1], 1 }

</bundles_post_ra>
